<compile_context>
chip_gen: v7x
topology: tpu7x:2x2x1
jax: 0.10.0
libtpu: 0.0.40
codegen_flags: <defaults>
</compile_context>

<pallas_src>
import jax
import jax.numpy as jnp
from jax.experimental import pallas as pl
from jax.experimental.pallas import tpu as pltpu


def _round_up(x, m):
    return ((x + m - 1) // m) * m


def _pointwise_conv_kernel(x_ref, w_ref, b_ref, o_ref):
    # x_ref: (nb, C, thw)  w_ref: (cls_pad, C)  b_ref: (cls_pad, 1)
    # o_ref: (nb, cls_pad, thw)
    w = w_ref[...]
    bcol = b_ref[...]
    # nb is a static block size -> unrolled loop of independent (cls_pad, C)@(C, thw)
    # matmuls; cheap, and the kernel is HBM-bound anyway.
    for i in range(x_ref.shape[0]):
        acc = jnp.dot(w, x_ref[i], preferred_element_type=jnp.float32)
        o_ref[i] = (acc + bcol).astype(o_ref.dtype)


def _choose_tiles(N, C, cls_pad, HW, itemsize):
    """Pick (nb, thw): batch items per block and lane-tile width."""
    LANE = 128
    hw_lane = _round_up(HW, LANE)
    # Per spatial position: x + out (double-buffered) + f32 accumulator temp.
    bytes_per_col = 2 * (C + cls_pad) * itemsize + 4 * cls_pad
    vmem_budget = 10 * 1024 * 1024  # leave headroom under the 32 MiB scoped limit
    thw_cap = min(65536, max(LANE, (vmem_budget // bytes_per_col) // LANE * LANE))

    if hw_lane <= thw_cap:
        # Whole spatial axis fits in one lane tile: tile over batch and fold several
        # batch items per step to amortize the fixed per-step pipeline overhead.
        thw = HW  # equals the full dim -> legal even if not a multiple of 128
        per_item = bytes_per_col * hw_lane
        nb = max(1, min(N, 16, vmem_budget // max(per_item, 1)))
        # Keep >=2 grid steps (v7x has two TensorCores + pipelining) when there is
        # enough data for it to matter; tiny problems prefer a single step.
        if nb >= N and N > 1 and N * per_item > (1 << 20):
            nb = max(1, pl.cdiv(N, 2))
        return nb, thw

    # Huge-HW regime: one batch item per step, big lane-dense tiles; the cdiv grid
    # handles the trailing partial tile with masked writes (no wrapper pad/slice).
    return 1, thw_cap


def conv1d_classifier_forward(x, weight, bias):
    """x: (N, in_ch, H, W); weight: (cls, in_ch, 1, 1); bias: (cls,)."""
    N, C, H, W = x.shape
    cls = weight.shape[0]
    HW = H * W
    itemsize = jnp.dtype(x.dtype).itemsize

    # Pad cls to the sublane quantum only if needed (keeps output stores unmasked).
    sublane = max(8, 32 // itemsize)
    cls_pad = _round_up(cls, sublane)

    # Free layout plumbing: NCHW is already channel-major, spatial goes to lanes.
    x3 = x.reshape(N, C, HW)
    w2d = weight.reshape(cls, C)
    b2d = bias.reshape(cls, 1)
    if cls_pad != cls:
        w2d = jnp.pad(w2d, ((0, cls_pad - cls), (0, 0)))
        b2d = jnp.pad(b2d, ((0, cls_pad - cls), (0, 0)))

    nb, thw = _choose_tiles(N, C, cls_pad, HW, itemsize)
    grid = (pl.cdiv(N, nb), pl.cdiv(HW, thw))

    cost = pl.CostEstimate(
        flops=2 * N * cls_pad * C * HW,
        transcendentals=0,
        bytes_accessed=(N * C * HW + cls_pad * C + cls_pad + N * cls_pad * HW) * itemsize,
    )

    out3 = pl.pallas_call(
        _pointwise_conv_kernel,
        out_shape=jax.ShapeDtypeStruct((N, cls_pad, HW), x.dtype),
        grid_spec=pltpu.PrefetchScalarGridSpec(
            num_scalar_prefetch=0,
            grid=grid,
            in_specs=[
                pl.BlockSpec((nb, C, thw), lambda i, j: (i, 0, j)),     # x tile
                pl.BlockSpec((cls_pad, C), lambda i, j: (0, 0)),        # full weight
                pl.BlockSpec((cls_pad, 1), lambda i, j: (0, 0)),        # bias column
            ],
            out_specs=pl.BlockSpec((nb, cls_pad, thw), lambda i, j: (i, 0, j)),
        ),
        compiler_params=pltpu.CompilerParams(
            # Both grid axes are independent -> megacore sharding on v7x.
            dimension_semantics=("parallel", "parallel"),
            # Explicit scoped-VMEM budget; tile selection keeps usage <= ~12 MiB.
            vmem_limit_bytes=32 * 1024 * 1024,
        ),
        cost_estimate=cost,
    )(x3, w2d, b2d)

    if cls_pad != cls:
        out3 = out3[:, :cls, :]
    return out3.reshape(N, cls, H, W)


if __name__ == "__main__":
    key = jax.random.PRNGKey(0)
    k_x, k_w, k_b = jax.random.split(key, 3)

    # Small shapes consistent with the module's forward: NCHW input.
    N, in_ch, Hs, Ws = 2, 4, 16, 16
    cls = 8

    x = jax.random.normal(k_x, (N, in_ch, Hs, Ws), dtype=jnp.float32)
    # Deterministic synthetic parameters (same shapes as nn.Conv1d(in_ch, cls, (1,1))).
    weight = jax.random.normal(k_w, (cls, in_ch, 1, 1), dtype=jnp.float32) * 0.1
    bias = jax.random.normal(k_b, (cls,), dtype=jnp.float32) * 0.1

    out = conv1d_classifier_forward(x, weight, bias)
    out = jax.block_until_ready(out)

    # Reference check in plain JAX (einsum over channels + bias).
    ref = jnp.einsum("nchw,oc->nohw", x, weight.reshape(cls, in_ch)) + bias[None, :, None, None]
    assert out.shape == (N, cls, Hs, Ws)
    assert jnp.allclose(out, ref, atol=1e-5, rtol=1e-5)

    print("KERNEL_OK")
</pallas_src>

<mosaic_0001>
module attributes {stable_mosaic.version = 11 : i64} {
  func.func @_pointwise_conv_kernel(%arg0: i32, %arg1: i32, %arg2: memref<2x4x256xf32, #tpu.memory_space<vmem>>, %arg3: memref<8x4xf32, #tpu.memory_space<vmem>>, %arg4: memref<8x1xf32, #tpu.memory_space<vmem>>, %arg5: memref<2x8x256xf32, #tpu.memory_space<vmem>>) attributes {dimension_semantics = [#tpu.dimension_semantics<parallel>, #tpu.dimension_semantics<parallel>], iteration_bounds = array<i64: 1, 1>, scalar_prefetch = 0 : i64, scratch_operands = 0 : i64, tpu.core_type = #tpu.core_type<tc>, window_params = [{transform_indices = @transform_0, window_bounds = array<i64: 2, 4, 256>}, {pipeline_mode = #tpu.pipeline_mode<synchronous>, transform_indices = @transform_1, window_bounds = array<i64: 8, 4>}, {pipeline_mode = #tpu.pipeline_mode<synchronous>, transform_indices = @transform_2, window_bounds = array<i64: 8, 1>}, {transform_indices = @transform_3, window_bounds = array<i64: 2, 8, 256>}]} {
    %c0 = arith.constant 0 : index
    %c0_0 = arith.constant 0 : index
    %0 = vector.load %arg3[%c0, %c0_0] : memref<8x4xf32, #tpu.memory_space<vmem>>, vector<8x4xf32>
    %c0_1 = arith.constant 0 : index
    %c0_2 = arith.constant 0 : index
    %1 = vector.load %arg4[%c0_1, %c0_2] : memref<8x1xf32, #tpu.memory_space<vmem>>, vector<8x1xf32>
    %c0_3 = arith.constant 0 : index
    %c0_4 = arith.constant 0 : index
    %c0_5 = arith.constant 0 : index
    %2 = vector.load %arg2[%c0_3, %c0_4, %c0_5] : memref<2x4x256xf32, #tpu.memory_space<vmem>>, vector<1x4x256xf32>
    %3 = vector.shape_cast %2 : vector<1x4x256xf32> to vector<4x256xf32>
    %cst = arith.constant dense<0.000000e+00> : vector<8x256xf32>
    %4 = tpu.matmul %0, %3, %cst {dimension_numbers = #tpu.dot_dimension_numbers<[1], [0], [0], [1], [0, 0, 1, 1], [], []>} : vector<8x4xf32>, vector<4x256xf32>, vector<8x256xf32> -> vector<8x256xf32>
    %5 = vector.broadcast %1 : vector<8x1xf32> to vector<8x256xf32>
    %6 = arith.addf %4, %5 : vector<8x256xf32>
    %c0_6 = arith.constant 0 : index
    %c0_7 = arith.constant 0 : index
    %c0_8 = arith.constant 0 : index
    %7 = vector.load %arg5[%c0_6, %c0_7, %c0_8] : memref<2x8x256xf32, #tpu.memory_space<vmem>>, vector<1x8x256xf32>
    %8 = vector.shape_cast %7 : vector<1x8x256xf32> to vector<8x256xf32>
    %9 = vector.shape_cast %6 : vector<8x256xf32> to vector<1x8x256xf32>
    tpu.vector_store %arg5[%c0_6, %c0_7, %c0_8], %9 {strides = array<i32>} : memref<2x8x256xf32, #tpu.memory_space<vmem>>, vector<1x8x256xf32>,
    %c1 = arith.constant 1 : index
    %c0_9 = arith.constant 0 : index
    %c0_10 = arith.constant 0 : index
    %10 = vector.load %arg2[%c1, %c0_9, %c0_10] : memref<2x4x256xf32, #tpu.memory_space<vmem>>, vector<1x4x256xf32>
    %11 = vector.shape_cast %10 : vector<1x4x256xf32> to vector<4x256xf32>
    %cst_11 = arith.constant dense<0.000000e+00> : vector<8x256xf32>
    %12 = tpu.matmul %0, %11, %cst_11 {dimension_numbers = #tpu.dot_dimension_numbers<[1], [0], [0], [1], [0, 0, 1, 1], [], []>} : vector<8x4xf32>, vector<4x256xf32>, vector<8x256xf32> -> vector<8x256xf32>
    %13 = vector.broadcast %1 : vector<8x1xf32> to vector<8x256xf32>
    %14 = arith.addf %12, %13 : vector<8x256xf32>
    %c1_12 = arith.constant 1 : index
    %c0_13 = arith.constant 0 : index
    %c0_14 = arith.constant 0 : index
    %15 = vector.load %arg5[%c1_12, %c0_13, %c0_14] : memref<2x8x256xf32, #tpu.memory_space<vmem>>, vector<1x8x256xf32>
    %16 = vector.shape_cast %15 : vector<1x8x256xf32> to vector<8x256xf32>
    %17 = vector.shape_cast %14 : vector<8x256xf32> to vector<1x8x256xf32>
    tpu.vector_store %arg5[%c1_12, %c0_13, %c0_14], %17 {strides = array<i32>} : memref<2x8x256xf32, #tpu.memory_space<vmem>>, vector<1x8x256xf32>,
    return
  }
  func.func @transform_0(%arg0: i32, %arg1: i32) -> (i32, i32, i32) {
    %c0_i32 = arith.constant 0 : i32
    %c0_i32_0 = arith.constant 0 : i32
    return %arg0, %c0_i32, %arg1 : i32, i32, i32
  }
  func.func @transform_1(%arg0: i32, %arg1: i32) -> (i32, i32) {
    %c0_i32 = arith.constant 0 : i32
    %c0_i32_0 = arith.constant 0 : i32
    %c0_i32_1 = arith.constant 0 : i32
    return %c0_i32, %c0_i32_0 : i32, i32
  }
  func.func @transform_2(%arg0: i32, %arg1: i32) -> (i32, i32) {
    %c0_i32 = arith.constant 0 : i32
    %c0_i32_0 = arith.constant 0 : i32
    %c0_i32_1 = arith.constant 0 : i32
    return %c0_i32, %c0_i32_0 : i32, i32
  }
  func.func @transform_3(%arg0: i32, %arg1: i32) -> (i32, i32, i32) {
    %c0_i32 = arith.constant 0 : i32
    %c0_i32_0 = arith.constant 0 : i32
    return %arg0, %c0_i32, %arg1 : i32, i32, i32
  }
}

</mosaic_0001>

<bundles_post_ra>
// kernel: tpu_custom_call.1
= control target key start
LH: loop header
LB: loop body
LE: loop exit
PB: predicated region body
PF: predicated region fallthrough
CT: control target
= control target key end

     0   :  { %vm29_vm0 = vcmask 1043456   ;;  %v244_v4 = vmov 0.0   ;;  %s297_s0 = inlined_call_operand.vmem [shape: f32[2,4,256], index: 0, kind: input, shape index: {}]   ;;  %s298_s1 = inlined_call_operand.vmem [shape: f32[8,4], index: 1, kind: input, shape index: {}]   ;;  %s299_s2 = inlined_call_operand.vmem [shape: f32[8,1], index: 2, kind: input, shape index: {}]   ;;  %s300_s3 = inlined_call_operand.hbm [shape: f32[2,8,256], index: 3, kind: output, shape index: {}]  }
   0x1   :  { %v17_v0 = vld [vmem:[%s297_s0] sm:$0xff]  ;;  %v208_v1 = vld [vmem:[%s297_s0 + $0x8] sm:$0xff]  ;;  %98 = vmatprep.mubr.f32.mxu0 %v244_v4  ;;  %179 = vmatprep.mubr.f32.mxu1 %v244_v4 }
   0x2   :  { %v24_v2 = vcombine.high %v17_v0, %v17_v0  ;;  %v110_v3 = vcombine.high %v208_v1, %v208_v1 }
   0x3   :  { %8 = vsyncpa [#allocation3], 0  ;;  %v15_v5 = vld [vmem:[%s298_s1] sm:$0xff]  ;;  %vm25_vm1 = vcmask 31744   ;;  %v245_v6 = vmov 0   ;;  %s246_s0 = smov [#allocation2]  }
   0x4   :  { %217 = vset.pattern.permute.xlu0 %v245_v6  ;;  %205 = vmatprep.subr.msk.mxu0 %vm29_vm0, %v24_v2  ;;  %v16_v7 = vld [vmem:[%s299_s2] sm:$0xff]  ;;  %s194_s1 = sshll.u32 %s246_s0, 4  ;;  %s195_s1 = int_to_ptr.vmem [resolvable:$true] %s194_s1 }
   0x5   :  { %209 = vmatprep.subr.msk.mxu1 %vm29_vm0, %v110_v3  ;;  %206 = vmatpush1.msk.msra.mxu0 %vm29_vm0, %v17_v0  ;;  %s220_s2 = scalar_lea.vmem %s195_s1, 512  ;;  %p225_p1 = scmp.lt.s32.totalorder %s195_s1, %s195_s1 }
   0x6   :  { %210 = vmatpush1.msk.msra.mxu1 %vm29_vm0, %v208_v1  ;;  %207 = vmatmul.mubr.msk.f32.vlgmr.msra.gmra.mrb[0].mxu0 %vm25_vm1, %v15_v5  ;;  %p221_p0 = scmp.ne.s32.totalorder %s195_s1, %s220_s2  ;;  %p226_p2 = scmp.lt.s32.totalorder %s220_s2, %s220_s2 }
   0x7   :  { %211 = vmatmul.mubr.msk.f32.vlgmr.msra.gmra.mrb[0].mxu1 %vm25_vm1, %v15_v5  ;;  %20 = vperm.xlu0 %217, %v16_v7  }
   0x8   :  { %p227_p3 = por %p226_p2, %p225_p1 }
   0xa   :  { %p228_p4 = pnand %p227_p3, %p221_p0 }
  0x86   :  { %v21_v8 = vpop.permute.xlu0 %20 }
  0xd9   :  { %v100_v9 = vpop.f32.mrb[0].mxu0 }
  0xda   :  { %v181_v10 = vpop.f32.mrb[0].mxu1  ;;  %v101_v11 = vadd.f32 %v100_v9, %v21_v8  ;;  %v102_v13 = vpop.f32.mrb[1].mxu0 }
  0xdb   :  { %v182_v12 = vadd.f32 %v181_v10, %v21_v8  ;;  %v183_v14 = vpop.f32.mrb[1].mxu1  ;;  %v103_v15 = vadd.f32 %v102_v13, %v21_v8 }
  0xdc   :  { %v184_v16 = vadd.f32 %v183_v14, %v21_v8  ;;  %105 = vst [vmem:[#allocation2] sm:$0xff] %v101_v11 }
  0xdd   :  { %187 = vst [vmem:[#allocation2 + $0x10] sm:$0xff] %v182_v12  ;;  %106 = vst [vmem:[#allocation2 + $0x8] sm:$0xff] %v103_v15 }
  0xde   :  { %188 = vst [vmem:[#allocation2 + $0x18] sm:$0xff] %v184_v16 }
  0xdf   :  { %231 = shalt.err (!%p228_p4)
}
  0xe0   :  { %s232_s22 = scalar_lea.hbm %s300_s3, 512 }
  0xe1   :  { %p233_p5 = scmp.ne.s32.totalorder %s300_s3, %s232_s22  ;;  %p236_p6 = scmp.lt.u32.totalorder %s232_s22, %s300_s3 }
  0xe3   :  { %p238_p7 = pnand %p236_p6, %p233_p5 }
  0xe5   :  { %241 = shalt.err (!%p238_p7)
}
  0xe6   :  { %s247_s27 = smov 256   ;;  %s248_s28 = smov 16  }
  0xe7   :  { %200 = dma.vmem_to_hbm [thread:$0]  %s195_s1, 512, %s300_s3, [#allocation3], %s247_s27, %s247_s27, %s248_s28  }
  0xe8   :  { %242 = dma.done.wait [#allocation3], 512  }
  0xe9   :  { %243 = vsyncadd [#allocation3], 4294966784 }
  0xea   :  { %204 = vsyncpa [#allocation3], 1 }

</bundles_post_ra>
